<compile_context>
chip_gen: v7x
topology: tpu7x:2x2x1
jax: 0.10.0
libtpu: 0.0.40
codegen_flags: <defaults>
</compile_context>

<pallas_src>
import math
import jax
import jax.numpy as jnp
from jax import lax
from jax.experimental import pallas as pl
from jax.experimental.pallas import tpu as pltpu


def _round_up(x: int, m: int) -> int:
    return (x + m - 1) // m * m


def _gelu(h, exact: bool):
    if exact:
        # Exact erf GELU (matches nn.GELU() default in function form). Expensive on
        # v6e/v7x (long f32 VPU polynomial) -- only use when bit-faithfulness matters.
        return 0.5 * h * (1.0 + lax.erf(h * (1.0 / math.sqrt(2.0))))
    # tanh approximation -> EUP slot (otherwise idle), production default.
    return jax.nn.gelu(h, approximate=True)


# ---------------------------------------------------------------------------
# Kernels
# ---------------------------------------------------------------------------

def make_resident_kernel(exact_gelu: bool):
    """Weights fully VMEM-resident; grid = (row_tiles,)."""

    def kernel(x_ref, w1_ref, b1_ref, w2_ref, b2_ref, o_ref):
        h_pre = jnp.dot(x_ref[...], w1_ref[...], preferred_element_type=jnp.float32)
        h_act = _gelu(h_pre + b1_ref[...], exact_gelu)
        # TODO(synk): Dropout is a no-op in eval mode; training-mode stochastic dropout
        # (pltpu.prng_seed + pltpu.prng_random_bits mask) intentionally omitted.
        o_ref[...] = (jnp.dot(h_act.astype(jnp.bfloat16), w2_ref[...],
                              preferred_element_type=jnp.float32)
                      + b2_ref[...]).astype(o_ref.dtype)

    return kernel


def make_streamed_kernel(exact_gelu: bool, tile_h: int, acc_in_out: bool):
    """H-streamed weights; grid = (row_tiles, h_tiles), k is the reduction axis."""

    def kernel(x_ref, w1_ref, b1_ref, w2_ref, b2_ref, o_ref, *scratch):
        acc_ref = o_ref if acc_in_out else scratch[0]
        k = pl.program_id(1)

        @pl.when(k == 0)
        def _():
            acc_ref[...] = jnp.zeros_like(acc_ref)

        # First linear on this H tile: (tb, Dp)bf16 @ (Dp, th)bf16 -> f32 on MXU.
        h_pre = jnp.dot(x_ref[...], w1_ref[...], preferred_element_type=jnp.float32)
        h_start = pl.multiple_of(k * tile_h, 128)
        h_pre = h_pre + b1_ref[:, pl.ds(h_start, tile_h)]
        h_act = _gelu(h_pre, exact_gelu)

        # TODO(synk): Dropout is a no-op in eval mode; training-mode mask omitted.

        # Second linear partial product: accumulate (tb, th) @ (th, Dp) in f32.
        acc_ref[...] = acc_ref[...] + jnp.dot(h_act.astype(jnp.bfloat16), w2_ref[...],
                                              preferred_element_type=jnp.float32)

        @pl.when(k == pl.num_programs(1) - 1)
        def _():
            if acc_in_out:
                o_ref[...] = o_ref[...] + b2_ref[...]
            else:
                o_ref[...] = (acc_ref[...] + b2_ref[...]).astype(o_ref.dtype)

    return kernel


# ---------------------------------------------------------------------------
# Parameter preparation (hoisted out of the per-call path)
# ---------------------------------------------------------------------------

def prepare_expert_params(w1, b1, w2, b2):
    """Pad feature dims to multiples of 128 and cast weights to bf16, ONCE."""
    d, h = w1.shape
    assert w2.shape == (h, d) and b1.shape == (h,) and b2.shape == (d,)
    d_p = _round_up(d, 128)
    h_p = _round_up(h, 128)
    # Zero padding is exact: padded input cols hit zero weight rows, padded hidden
    # units have zero weights/bias (gelu(0)=0), padded output cols are sliced off.
    w1_p = jnp.pad(w1, ((0, d_p - d), (0, h_p - h))).astype(jnp.bfloat16)
    w2_p = jnp.pad(w2, ((0, h_p - h), (0, d_p - d))).astype(jnp.bfloat16)
    b1_p = jnp.pad(b1, (0, h_p - h)).astype(jnp.float32).reshape(1, h_p)
    b2_p = jnp.pad(b2, (0, d_p - d)).astype(jnp.float32).reshape(1, d_p)
    return dict(w1=w1_p, b1=b1_p, w2=w2_p, b2=b2_p, d=d, h=h, d_p=d_p, h_p=h_p)


# ---------------------------------------------------------------------------
# Tile / VMEM configuration (per TPU generation)
# ---------------------------------------------------------------------------

def _largest_div_tile(h_p: int, target: int) -> int:
    """Largest multiple of 128 that divides h_p and is <= target."""
    t = max(128, min(_round_up(target, 128), h_p))
    t = (t // 128) * 128
    while t > 128 and h_p % t != 0:
        t -= 128
    return t


def _select_config(n, d_p, h_p, out_itemsize, acc_in_out, block_rows, tile_h):
    try:
        kind = jax.devices()[0].device_kind.lower()
    except Exception:  # pragma: no cover
        kind = ""
    is_v7 = "v7" in kind
    if is_v7:
        budget, br_target, th_target = 40 << 20, 512, 512      # 64 MiB/TC physical
    elif "v6" in kind:
        budget, br_target, th_target = 96 << 20, 1024, 1024    # 128 MiB physical
    elif "v5" in kind:
        budget, br_target, th_target = 96 << 20, 384, 1024
    else:
        budget, br_target, th_target = 40 << 20, 512, 512      # conservative default

    if block_rows is None:
        block_rows = br_target
        if is_v7:
            # Keep >=2 row tiles so the 'parallel' axis feeds both TensorCores.
            block_rows = min(block_rows, max(8, _round_up(-(-n // 2), 8)))
    block_rows = max(8, min(_round_up(block_rows, 8), _round_up(n, 8)))

    def need_bytes(br, th, resident):
        nb = 2 * br * d_p * 2                       # x tile, bf16, double-buffered
        nb += 2 * br * d_p * out_itemsize           # out tile, double-buffered
        nb += 8 * d_p * (h_p if resident else th)   # w1 + w2, bf16, 2 buffers each
        nb += 2 * (h_p + d_p) * 4                   # biases (f32), 2 buffers
        if (not resident) and (not acc_in_out):
            nb += br * d_p * 4                      # f32 accumulator scratch
        return nb

    # Prefer VMEM-resident weights (weights DMA'd from HBM once for all row tiles).
    resident = False
    if tile_h is None or _round_up(tile_h, 128) >= h_p:
        if need_bytes(block_rows, h_p, True) <= 0.7 * budget:
            resident = True

    if resident:
        tile_h_sel = h_p
    else:
        tile_h_sel = _largest_div_tile(h_p, tile_h if tile_h is not None else th_target)
        while (need_bytes(block_rows, tile_h_sel, False) > 0.8 * budget
               and tile_h_sel > 128):
            tile_h_sel = _largest_div_tile(h_p, tile_h_sel - 128)
        while (need_bytes(block_rows, tile_h_sel, False) > 0.8 * budget
               and block_rows > 8):
            block_rows = max(8, _round_up(block_rows // 2, 8))

    need = need_bytes(block_rows, tile_h_sel, resident)
    vmem_limit = int(min(budget, max(need + need // 2, 16 << 20)))
    return block_rows, tile_h_sel, resident, vmem_limit


# ---------------------------------------------------------------------------
# Forward
# ---------------------------------------------------------------------------

def expert_forward_prepared(x, params, *, block_rows=None, tile_h=None,
                            exact_gelu=False, out_dtype=None):
    """Expert MLP forward with pre-padded / pre-cast parameters."""
    w1_p, b1_p, w2_p, b2_p = params["w1"], params["b1"], params["w2"], params["b2"]
    d, h, d_p, h_p = params["d"], params["h"], params["d_p"], params["h_p"]

    n, d_in = x.shape
    assert d_in == d
    out_dtype = jnp.dtype(out_dtype or x.dtype)
    itemsize = out_dtype.itemsize
    acc_in_out = out_dtype == jnp.float32

    block_rows, tile_h, resident, vmem_limit = _select_config(
        n, d_p, h_p, itemsize, acc_in_out, block_rows, tile_h)

    n_p = _round_up(n, block_rows)
    row_tiles = n_p // block_rows
    x_p = jnp.pad(x, ((0, n_p - n), (0, d_p - d))).astype(jnp.bfloat16)

    weight_bytes = (d_p * h_p + h_p * d_p) * 2
    weight_reads = 1 if resident else row_tiles
    cost = pl.CostEstimate(
        flops=2 * 2 * n_p * d_p * h_p,
        transcendentals=n_p * h_p,
        bytes_accessed=(n_p * d_p * 2                 # x read (bf16)
                        + weight_reads * weight_bytes  # weights, true streaming count
                        + (h_p + d_p) * 4              # biases
                        + n_p * d_p * itemsize),       # output write
    )

    if resident:
        out = pl.pallas_call(
            make_resident_kernel(exact_gelu),
            out_shape=jax.ShapeDtypeStruct((n_p, d_p), out_dtype),
            grid_spec=pltpu.PrefetchScalarGridSpec(
                num_scalar_prefetch=0,
                grid=(row_tiles,),
                in_specs=[
                    pl.BlockSpec((block_rows, d_p), lambda i: (i, 0)),  # x row tile
                    pl.BlockSpec((d_p, h_p), lambda i: (0, 0)),         # w1 (resident)
                    pl.BlockSpec((1, h_p), lambda i: (0, 0)),           # b1 (resident)
                    pl.BlockSpec((h_p, d_p), lambda i: (0, 0)),         # w2 (resident)
                    pl.BlockSpec((1, d_p), lambda i: (0, 0)),           # b2 (resident)
                ],
                out_specs=pl.BlockSpec((block_rows, d_p), lambda i: (i, 0)),
            ),
            compiler_params=pltpu.CompilerParams(
                dimension_semantics=("parallel",),
                vmem_limit_bytes=vmem_limit,
            ),
            cost_estimate=cost,
        )(x_p, w1_p, b1_p, w2_p, b2_p)
    else:
        h_tiles = h_p // tile_h
        scratch = [] if acc_in_out else [pltpu.VMEM((block_rows, d_p), jnp.float32)]
        out = pl.pallas_call(
            make_streamed_kernel(exact_gelu, tile_h, acc_in_out),
            out_shape=jax.ShapeDtypeStruct((n_p, d_p), out_dtype),
            grid_spec=pltpu.PrefetchScalarGridSpec(
                num_scalar_prefetch=0,
                grid=(row_tiles, h_tiles),
                in_specs=[
                    pl.BlockSpec((block_rows, d_p), lambda i, k: (i, 0)),  # x row tile
                    pl.BlockSpec((d_p, tile_h), lambda i, k: (0, k)),      # w1 H tile
                    pl.BlockSpec((1, h_p), lambda i, k: (0, 0)),           # b1 full/resident
                    pl.BlockSpec((tile_h, d_p), lambda i, k: (k, 0)),      # w2 H tile
                    pl.BlockSpec((1, d_p), lambda i, k: (0, 0)),           # b2
                ],
                out_specs=pl.BlockSpec((block_rows, d_p), lambda i, k: (i, 0)),
                scratch_shapes=scratch,
            ),
            compiler_params=pltpu.CompilerParams(
                dimension_semantics=("parallel", "arbitrary"),
                vmem_limit_bytes=vmem_limit,
            ),
            cost_estimate=cost,
        )(x_p, w1_p, b1_p, w2_p, b2_p)

    return out[:n, :d]


def expert_forward(x, w1, b1, w2, b2, **kwargs):
    """Convenience wrapper: prepare params then run (for one-off calls)."""
    return expert_forward_prepared(x, prepare_expert_params(w1, b1, w2, b2), **kwargs)


def reference_forward(x, w1, b1, w2, b2):
    # f32, exact-erf GELU (PyTorch nn.GELU() default).
    h = x @ w1 + b1
    h = 0.5 * h * (1.0 + lax.erf(h / jnp.sqrt(2.0)))
    return h @ w2 + b2


if __name__ == "__main__":
    # Small shapes consistent with the module, chosen to exercise padding and both
    # execution modes: tokens=72, input_dim=48, hidden_dim=320.
    N, D, H = 72, 48, 320

    key = jax.random.PRNGKey(0)
    kx, kw1, kb1, kw2, kb2 = jax.random.split(key, 5)

    x = jax.random.normal(kx, (N, D), dtype=jnp.float32)

    # Deterministic param init (kaiming-uniform-ish bounds like nn.Linear defaults).
    lim1 = 1.0 / math.sqrt(D)
    lim2 = 1.0 / math.sqrt(H)
    w1 = jax.random.uniform(kw1, (D, H), minval=-lim1, maxval=lim1, dtype=jnp.float32)
    b1 = jax.random.uniform(kb1, (H,), minval=-lim1, maxval=lim1, dtype=jnp.float32)
    w2 = jax.random.uniform(kw2, (H, D), minval=-lim2, maxval=lim2, dtype=jnp.float32)
    b2 = jax.random.uniform(kb2, (D,), minval=-lim2, maxval=lim2, dtype=jnp.float32)

    # Weight pad/cast hoisted out of the per-call path (done once).
    params = prepare_expert_params(w1, b1, w2, b2)
    ref = reference_forward(x, w1, b1, w2, b2)

    # 1) Auto config: weights are tiny, so the VMEM-resident single-K-step path runs.
    out_auto = jax.block_until_ready(expert_forward_prepared(x, params))
    assert out_auto.shape == (N, D)
    # bf16 operands + tanh-approx GELU vs f32/erf reference -> relaxed tolerance.
    assert jnp.allclose(out_auto, ref, atol=3e-2, rtol=3e-2), "resident path mismatch"

    # 2) Forced H-streaming path (exercises the reduction-axis accumulator, grid (5,3)).
    out_stream = jax.block_until_ready(
        expert_forward_prepared(x, params, block_rows=16, tile_h=128))
    assert out_stream.shape == (N, D)
    assert jnp.allclose(out_stream, ref, atol=3e-2, rtol=3e-2), "streamed path mismatch"

    print("KERNEL_OK")
</pallas_src>

<mosaic_0001>
module attributes {stable_mosaic.version = 11 : i64} {
  func.func @kernel(%arg0: i32, %arg1: memref<72x128xbf16, #tpu.memory_space<vmem>>, %arg2: memref<128x384xbf16, #tpu.memory_space<vmem>>, %arg3: memref<1x384xf32, #tpu.memory_space<vmem>>, %arg4: memref<384x128xbf16, #tpu.memory_space<vmem>>, %arg5: memref<1x128xf32, #tpu.memory_space<vmem>>, %arg6: memref<72x128xf32, #tpu.memory_space<vmem>>) attributes {dimension_semantics = [#tpu.dimension_semantics<parallel>], iteration_bounds = array<i64: 1>, scalar_prefetch = 0 : i64, scratch_operands = 0 : i64, tpu.core_type = #tpu.core_type<tc>, window_params = [{transform_indices = @transform_0, window_bounds = array<i64: 72, 128>}, {pipeline_mode = #tpu.pipeline_mode<synchronous>, transform_indices = @transform_1, window_bounds = array<i64: 128, 384>}, {pipeline_mode = #tpu.pipeline_mode<synchronous>, transform_indices = @transform_2, window_bounds = array<i64: 1, 384>}, {pipeline_mode = #tpu.pipeline_mode<synchronous>, transform_indices = @transform_3, window_bounds = array<i64: 384, 128>}, {pipeline_mode = #tpu.pipeline_mode<synchronous>, transform_indices = @transform_4, window_bounds = array<i64: 1, 128>}, {transform_indices = @transform_5, window_bounds = array<i64: 72, 128>}]} {
    %c0 = arith.constant 0 : index
    %c0_0 = arith.constant 0 : index
    %0 = vector.load %arg1[%c0, %c0_0] : memref<72x128xbf16, #tpu.memory_space<vmem>>, vector<72x128xbf16>
    %c0_1 = arith.constant 0 : index
    %c0_2 = arith.constant 0 : index
    %1 = vector.load %arg2[%c0_1, %c0_2] : memref<128x384xbf16, #tpu.memory_space<vmem>>, vector<128x384xbf16>
    %cst = arith.constant dense<0.000000e+00> : vector<72x384xf32>
    %2 = tpu.matmul %0, %1, %cst {dimension_numbers = #tpu.dot_dimension_numbers<[1], [0], [0], [1], [0, 0, 1, 1], [], []>} : vector<72x128xbf16>, vector<128x384xbf16>, vector<72x384xf32> -> vector<72x384xf32>
    %c0_3 = arith.constant 0 : index
    %c0_4 = arith.constant 0 : index
    %3 = vector.load %arg3[%c0_3, %c0_4] : memref<1x384xf32, #tpu.memory_space<vmem>>, vector<1x384xf32>
    %4 = vector.broadcast %3 : vector<1x384xf32> to vector<72x384xf32>
    %5 = arith.addf %2, %4 : vector<72x384xf32>
    %6 = arith.mulf %5, %5 : vector<72x384xf32>
    %7 = arith.mulf %5, %6 : vector<72x384xf32>
    %cst_5 = arith.constant 4.471500e-02 : f32
    %8 = vector.broadcast %cst_5 : f32 to vector<72x384xf32>
    %9 = arith.mulf %8, %7 : vector<72x384xf32>
    %10 = arith.addf %5, %9 : vector<72x384xf32>
    %cst_6 = arith.constant 0.797884583 : f32
    %11 = vector.broadcast %cst_6 : f32 to vector<72x384xf32>
    %12 = arith.mulf %11, %10 : vector<72x384xf32>
    %13 = math.tanh %12 : vector<72x384xf32>
    %cst_7 = arith.constant 1.000000e+00 : f32
    %14 = vector.broadcast %cst_7 : f32 to vector<72x384xf32>
    %15 = arith.addf %14, %13 : vector<72x384xf32>
    %cst_8 = arith.constant 5.000000e-01 : f32
    %16 = vector.broadcast %cst_8 : f32 to vector<72x384xf32>
    %17 = arith.mulf %16, %15 : vector<72x384xf32>
    %18 = arith.mulf %5, %17 : vector<72x384xf32>
    %19 = arith.truncf %18 : vector<72x384xf32> to vector<72x384xbf16>
    %c0_9 = arith.constant 0 : index
    %c0_10 = arith.constant 0 : index
    %20 = vector.load %arg4[%c0_9, %c0_10] : memref<384x128xbf16, #tpu.memory_space<vmem>>, vector<384x128xbf16>
    %cst_11 = arith.constant dense<0.000000e+00> : vector<72x128xf32>
    %21 = tpu.matmul %19, %20, %cst_11 {dimension_numbers = #tpu.dot_dimension_numbers<[1], [0], [0], [1], [0, 0, 1, 1], [], []>} : vector<72x384xbf16>, vector<384x128xbf16>, vector<72x128xf32> -> vector<72x128xf32>
    %c0_12 = arith.constant 0 : index
    %c0_13 = arith.constant 0 : index
    %22 = vector.load %arg5[%c0_12, %c0_13] : memref<1x128xf32, #tpu.memory_space<vmem>>, vector<1x128xf32>
    %23 = vector.broadcast %22 : vector<1x128xf32> to vector<72x128xf32>
    %24 = arith.addf %21, %23 : vector<72x128xf32>
    %c0_14 = arith.constant 0 : index
    %c0_15 = arith.constant 0 : index
    %25 = vector.load %arg6[%c0_14, %c0_15] : memref<72x128xf32, #tpu.memory_space<vmem>>, vector<72x128xf32>
    tpu.vector_store %arg6[%c0_14, %c0_15], %24 {strides = array<i32>} : memref<72x128xf32, #tpu.memory_space<vmem>>, vector<72x128xf32>,
    return
  }
  func.func @transform_0(%arg0: i32) -> (i32, i32) {
    %c0_i32 = arith.constant 0 : i32
    %c0_i32_0 = arith.constant 0 : i32
    return %arg0, %c0_i32 : i32, i32
  }
  func.func @transform_1(%arg0: i32) -> (i32, i32) {
    %c0_i32 = arith.constant 0 : i32
    %c0_i32_0 = arith.constant 0 : i32
    %c0_i32_1 = arith.constant 0 : i32
    return %c0_i32, %c0_i32_0 : i32, i32
  }
  func.func @transform_2(%arg0: i32) -> (i32, i32) {
    %c0_i32 = arith.constant 0 : i32
    %c0_i32_0 = arith.constant 0 : i32
    %c0_i32_1 = arith.constant 0 : i32
    return %c0_i32, %c0_i32_0 : i32, i32
  }
  func.func @transform_3(%arg0: i32) -> (i32, i32) {
    %c0_i32 = arith.constant 0 : i32
    %c0_i32_0 = arith.constant 0 : i32
    %c0_i32_1 = arith.constant 0 : i32
    return %c0_i32, %c0_i32_0 : i32, i32
  }
  func.func @transform_4(%arg0: i32) -> (i32, i32) {
    %c0_i32 = arith.constant 0 : i32
    %c0_i32_0 = arith.constant 0 : i32
    %c0_i32_1 = arith.constant 0 : i32
    return %c0_i32, %c0_i32_0 : i32, i32
  }
  func.func @transform_5(%arg0: i32) -> (i32, i32) {
    %c0_i32 = arith.constant 0 : i32
    %c0_i32_0 = arith.constant 0 : i32
    return %arg0, %c0_i32 : i32, i32
  }
}

</mosaic_0001>

<bundles_post_ra>
// kernel: tpu_custom_call.1
= control target key start
LH: loop header
LB: loop body
LE: loop exit
PB: predicated region body
PF: predicated region fallthrough
CT: control target
= control target key end

     0   :  { %10 = vsyncpa [#allocation3], 0  ;;  %s1915_s0 = inlined_call_operand.hbm [shape: bf16[72,128], index: 0, kind: input, shape index: {}]   ;;  %s1916_s1 = inlined_call_operand.hbm [shape: bf16[128,384], index: 1, kind: input, shape index: {}]   ;;  %s1917_s2 = inlined_call_operand.vmem [shape: f32[1,384], index: 2, kind: input, shape index: {}]   ;;  %s1918_s3 = inlined_call_operand.hbm [shape: bf16[384,128], index: 3, kind: input, shape index: {}]   ;;  %s1919_s4 = inlined_call_operand.vmem [shape: f32[1,128], index: 4, kind: input, shape index: {}]   ;;  %s1920_s5 = inlined_call_operand.hbm [shape: f32[72,128], index: 5, kind: output, shape index: {}]  }
   0x1   :  { %11 = vsyncpa [#allocation6], 0 }
   0x2   :  { %12 = vsyncpa [#allocation4], 0  ;;  %s1478_s18 = smov [#allocation5]   ;;  %s1384_s22 = scalar_lea.hbm %s1916_s1, 3072 }
   0x3   :  { %s30_s19 = sshll.u32 %s1478_s18, 4  ;;  %p1385_p0 = scmp.ne.s32.totalorder %s1916_s1, %s1384_s22  ;;  %s31_s19 = int_to_ptr.vmem [resolvable:$true] %s30_s19 }
   0x4   :  { %p1388_p1 = scmp.lt.u32.totalorder %s1384_s22, %s1916_s1 }
   0x6   :  { %p1390_p2 = pnand %p1388_p1, %p1385_p0 }
   0x8   :  { %1393 = shalt.err (!%p1390_p2)
}
   0x9   :  { %s1394_s27 = scalar_lea.vmem %s31_s19, 3072  ;;  %p1399_p4 = scmp.lt.s32.totalorder %s31_s19, %s31_s19 }
   0xa   :  { %p1395_p3 = scmp.ne.s32.totalorder %s31_s19, %s1394_s27  ;;  %p1400_p5 = scmp.lt.s32.totalorder %s1394_s27, %s1394_s27 }
   0xc   :  { %p1401_p6 = por %p1400_p5, %p1399_p4 }
   0xe   :  { %p1402_p7 = pnand %p1401_p6, %p1395_p3 }
  0x10   :  { %1405 = shalt.err (!%p1402_p7)
}
  0x11   :  { %s1479_s28 = smov 192   ;;  %s1480_s29 = smov 12  }
  0x12   :  { %36 = dma.hbm_to_vmem [thread:$0]  %s1916_s1, 3072, %s31_s19, [#allocation6], %s1479_s28, %s1479_s28, %s1480_s29  }
  0x13   :  { %s1481_s7 = smov [#allocation2]   ;;  %s1406_s11 = scalar_lea.hbm %s1915_s0, 576 }
  0x14   :  { %s18_s8 = sshll.u32 %s1481_s7, 4  ;;  %p1407_p8 = scmp.ne.s32.totalorder %s1915_s0, %s1406_s11  ;;  %s19_s8 = int_to_ptr.vmem [resolvable:$true] %s18_s8 }
  0x15   :  { %p1410_p9 = scmp.lt.u32.totalorder %s1406_s11, %s1915_s0 }
  0x17   :  { %p1412_p10 = pnand %p1410_p9, %p1407_p8 }
  0x19   :  { %1415 = shalt.err (!%p1412_p10)
}
  0x1a   :  { %s1416_s16 = scalar_lea.vmem %s19_s8, 576  ;;  %p1421_p12 = scmp.lt.s32.totalorder %s19_s8, %s19_s8 }
  0x1b   :  { %p1417_p11 = scmp.ne.s32.totalorder %s19_s8, %s1416_s16  ;;  %p1422_p13 = scmp.lt.s32.totalorder %s1416_s16, %s1416_s16 }
  0x1d   :  { %p1423_p0 = por %p1422_p13, %p1421_p12 }
  0x1f   :  { %p1424_p1 = pnand %p1423_p0, %p1417_p11 }
  0x21   :  { %1427 = shalt.err (!%p1424_p1)
}
  0x22   :  { %s1482_s1 = smov 64   ;;  %s1483_s17 = smov 4  }
  0x23   :  { %24 = dma.hbm_to_vmem [thread:$0]  %s1915_s0, 576, %s19_s8, [#allocation3], %s1482_s1, %s1482_s1, %s1483_s17  }
  0x24   :  { %s1484_s20 = smov [#allocation7]   ;;  %s1428_s24 = scalar_lea.hbm %s1918_s3, 3072 }
  0x25   :  { %s44_s21 = sshll.u32 %s1484_s20, 4  ;;  %p1429_p2 = scmp.ne.s32.totalorder %s1918_s3, %s1428_s24  ;;  %s45_s21 = int_to_ptr.vmem [resolvable:$true] %s44_s21 }
  0x26   :  { %p1432_p3 = scmp.lt.u32.totalorder %s1428_s24, %s1918_s3 }
  0x28   :  { %p1434_p4 = pnand %p1432_p3, %p1429_p2 }
  0x2a   :  { %1437 = shalt.err (!%p1434_p4)
}
  0x2b   :  { %s1438_s29 = scalar_lea.vmem %s45_s21, 3072  ;;  %p1443_p6 = scmp.lt.s32.totalorder %s45_s21, %s45_s21 }
  0x2c   :  { %p1439_p5 = scmp.ne.s32.totalorder %s45_s21, %s1438_s29  ;;  %p1444_p7 = scmp.lt.s32.totalorder %s1438_s29, %s1438_s29 }
  0x2e   :  { %p1445_p8 = por %p1444_p7, %p1443_p6 }
  0x30   :  { %p1446_p9 = pnand %p1445_p8, %p1439_p5 }
  0x32   :  { %1449 = shalt.err (!%p1446_p9)
}
  0x33   :  { %50 = dma.hbm_to_vmem [thread:$0]  %s1918_s3, 3072, %s45_s21, [#allocation6], %s1482_s1, %s1482_s1, %s1483_s17  }
  0x34   :  { %1472 = dma.done.wait [#allocation3], 576  }
  0x35   :  { %1473 = vsyncadd [#allocation3], 4294966720 }
  0x36   :  { %1474 = dma.done.wait [#allocation6], 6144  }
  0x37   :  { %1475 = vsyncadd [#allocation6], 4294961152  ;;  %v1485_v0 = vmov 0.0   ;;  %vm1486_vm0 = vmmov 0   ;;  %v1487_v1 = vmov 0   ;;  %v1306_v26 = vld [vmem:[#allocation7 + $0x40] sm:$0xff]   ;;  %v106_v55 = vlaneseq }
  0x38   :  { %1184 = vmatprep.subr.bf16.mxu1 %v1485_v0  ;;  %1200 = vmatprep.mubr.msk.bf16.mxu1 %vm1486_vm0, %v1485_v0  ;;  %v1269_v2 = vld [vmem:[#allocation5 + $0x4] ss:$12 sps:$4 sm:$0xff]   ;;  %v1271_v3 = vld [vmem:[#allocation5 + $0x8] ss:$12 sps:$4 sm:$0xff]   ;;  %v1272_v4 = vld [vmem:[#allocation5] ss:$12 sps:$4 sm:$0xff]  }
  0x39   :  { %309 = vmatprep.mubr.bf16.mxu0 %v1487_v1  ;;  %277 = vmatprep.subr.bf16.mxu0 %v1269_v2  ;;  %v1273_v5 = vld [vmem:[#allocation5 + $0x1c] ss:$12 sps:$4 sm:$0xff]   ;;  %v1275_v6 = vld [vmem:[#allocation5 + $0x20] ss:$12 sps:$4 sm:$0xff]   ;;  %v1276_v7 = vld [vmem:[#allocation5 + $0x18] ss:$12 sps:$4 sm:$0xff]  }
  0x3a   :  { %1185 = vmatpush3.bf16.msra.mxu1 %v1271_v3  ;;  %278 = vmatpush1.bf16.msra.mxu0 %v1272_v4  ;;  %v1277_v8 = vld [vmem:[#allocation5 + $0x34] ss:$12 sps:$4 sm:$0xff]   ;;  %v1279_v9 = vld [vmem:[#allocation5 + $0x38] ss:$12 sps:$4 sm:$0xff]   ;;  %v1280_v10 = vld [vmem:[#allocation5 + $0x30] ss:$12 sps:$4 sm:$0xff]  }
  0x3b   :  { %1186 = vmatprep.subr.bf16.mxu1 %v1485_v0  ;;  %279 = vmatprep.subr.bf16.mxu0 %v1273_v5  ;;  %v1281_v11 = vld [vmem:[#allocation5 + $0x4c] ss:$12 sps:$4 sm:$0xff]   ;;  %v1283_v12 = vld [vmem:[#allocation5 + $0x50] ss:$12 sps:$4 sm:$0xff]   ;;  %v1284_v13 = vld [vmem:[#allocation5 + $0x48] ss:$12 sps:$4 sm:$0xff]  }
  0x3c   :  { %v1285_v14 = vld [vmem:[#allocation5 + $0x64] ss:$12 sps:$4 sm:$0xff]   ;;  %v1287_v15 = vld [vmem:[#allocation5 + $0x68] ss:$12 sps:$4 sm:$0xff]   ;;  %v1288_v16 = vld [vmem:[#allocation5 + $0x60] ss:$12 sps:$4 sm:$0xff]  }
  0x3d   :  { %v1289_v17 = vld [vmem:[#allocation5 + $0x7c] ss:$12 sps:$4 sm:$0xff]   ;;  %v1291_v18 = vld [vmem:[#allocation5 + $0x80] ss:$12 sps:$4 sm:$0xff]   ;;  %v1292_v19 = vld [vmem:[#allocation5 + $0x78] ss:$12 sps:$4 sm:$0xff]  }
  0x3e   :  { %1187 = vmatpush3.bf16.msra.mxu1 %v1275_v6  ;;  %280 = vmatpush1.bf16.msra.mxu0 %v1276_v7  ;;  %v1293_v20 = vld [vmem:[#allocation5 + $0x94] ss:$12 sps:$4 sm:$0xff]   ;;  %v1295_v21 = vld [vmem:[#allocation5 + $0x98] ss:$12 sps:$4 sm:$0xff]   ;;  %v1296_v22 = vld [vmem:[#allocation5 + $0x90] ss:$12 sps:$4 sm:$0xff]  }
  0x3f   :  { %1188 = vmatprep.subr.bf16.mxu1 %v1485_v0  ;;  %281 = vmatprep.subr.bf16.mxu0 %v1277_v8  ;;  %v1297_v23 = vld [vmem:[#allocation5 + $0xac] ss:$12 sps:$4 sm:$0xff]   ;;  %v1299_v24 = vld [vmem:[#allocation5 + $0xb0] ss:$12 sps:$4 sm:$0xff]   ;;  %v1300_v25 = vld [vmem:[#allocation5 + $0xa8] ss:$12 sps:$4 sm:$0xff]  }
  0x40   :  { %v1301_v27 = vld [vmem:[#allocation2] sm:$0xff]   ;;  %v1302_v29 = vld [vmem:[#allocation2 + $0x8] sm:$0xff]   ;;  %v1303_v30 = vld [vmem:[#allocation2 + $0x10] sm:$0xff]   ;;  %v107_v56 = vshrl.u32 %v106_v55, 7 }
  0x41   :  { %v1307_v28 = vld [vmem:[#allocation7] sm:$0xff]   ;;  %v1304_v31 = vld [vmem:[#allocation2 + $0x18] sm:$0xff]   ;;  %v1305_v32 = vld [vmem:[#allocation2 + $0x20] ss:$0 sps:$4 sm:$0xff]  }
  0x42   :  { %1189 = vmatpush3.bf16.msra.mxu1 %v1279_v9  ;;  %282 = vmatpush1.bf16.msra.mxu0 %v1280_v10  ;;  %v1310_v33 = vld [vmem:[#allocation7 + $0x80] sm:$0xff]   ;;  %v1313_v34 = vld [vmem:[#allocation7 + $0x88] sm:$0xff]   ;;  %v1311_v37 = vld [vmem:[#allocation7 + $0x50] sm:$0xff]   ;;  %v116_v57 = vsub.s32 2, %v107_v56  ;;  %v108_v59 = vsub.s32 0, %v107_v56  ;;  %v112_v60 = vsub.s32 1, %v107_v56 }
  0x43   :  { %1190 = vmatprep.subr.bf16.mxu1 %v1485_v0  ;;  %283 = vmatprep.subr.bf16.mxu0 %v1281_v11  ;;  %v1308_v35 = vld [vmem:[#allocation7 + $0x48] sm:$0xff]   ;;  %v1312_v38 = vld [vmem:[#allocation7 + $0x10] sm:$0xff]   ;;  %v1317_v40 = vld [vmem:[#allocation7 + $0x98] sm:$0xff]  }
  0x44   :  { %v1309_v36 = vld [vmem:[#allocation7 + $0x8] sm:$0xff]   ;;  %v1315_v39 = vld [vmem:[#allocation7 + $0x90] sm:$0xff]   ;;  %v1314_v41 = vld [vmem:[#allocation7 + $0x58] sm:$0xff]  }
  0x45   :  { %v1316_v42 = vld [vmem:[#allocation7 + $0x18] sm:$0xff]   ;;  %v1318_v43 = vld [vmem:[#allocation7 + $0x60] sm:$0xff]   ;;  %v1323_v46 = vld [vmem:[#allocation7 + $0xa8] sm:$0xff]  }
  0x46   :  { %1191 = vmatpush3.bf16.msra.mxu1 %v1283_v12  ;;  %284 = vmatpush1.bf16.msra.mxu0 %v1284_v13  ;;  %v1319_v44 = vld [vmem:[#allocation7 + $0x20] sm:$0xff]   ;;  %v1321_v47 = vld [vmem:[#allocation7 + $0x68] sm:$0xff]   ;;  %v1326_v49 = vld [vmem:[#allocation7 + $0xb0] sm:$0xff]  }
  0x47   :  { %1192 = vmatprep.subr.bf16.mxu1 %v1485_v0  ;;  %285 = vmatprep.subr.bf16.mxu0 %v1285_v14  ;;  %v1320_v45 = vld [vmem:[#allocation7 + $0xa0] sm:$0xff]   ;;  %v1322_v48 = vld [vmem:[#allocation7 + $0x28] sm:$0xff]   ;;  %v1324_v50 = vld [vmem:[#allocation7 + $0x70] sm:$0xff]  }
  0x48   :  { %v1325_v51 = vld [vmem:[#allocation7 + $0x30] sm:$0xff]   ;;  %v1328_v52 = vld [vmem:[#allocation7 + $0xb8] sm:$0xff]  }
  0x49   :  { %v1327_v53 = vld [vmem:[#allocation7 + $0x78] sm:$0xff]  }
  0x4a   :  { %1193 = vmatpush3.bf16.msra.mxu1 %v1287_v15  ;;  %286 = vmatpush1.bf16.msra.mxu0 %v1288_v16  ;;  %v1329_v54 = vld [vmem:[#allocation7 + $0x38] sm:$0xff]  }
  0x4b   :  { %1194 = vmatprep.subr.bf16.mxu1 %v1485_v0  ;;  %287 = vmatprep.subr.bf16.mxu0 %v1289_v17  ;;  %v104_v58 = vld [vmem:[%s1917_s2] sm:$0x7] }
  0x4c   :  { %v1593_v61 = vrot.slane %v104_v58, %v116_v57  ;;  %v1595_v62 = vrot.slane %v104_v58, %v108_v59  ;;  %v1597_v63 = vrot.slane %v104_v58, %v112_v60 }
  0x4e   :  { %1195 = vmatpush3.bf16.msra.mxu1 %v1291_v18  ;;  %288 = vmatpush1.bf16.msra.mxu0 %v1292_v19 }
  0x4f   :  { %1196 = vmatprep.subr.bf16.mxu1 %v1485_v0  ;;  %289 = vmatprep.subr.bf16.mxu0 %v1293_v20 }
  0x52   :  { %1197 = vmatpush3.bf16.msra.mxu1 %v1295_v21  ;;  %290 = vmatpush1.bf16.msra.mxu0 %v1296_v22 }
  0x53   :  { %1198 = vmatprep.subr.bf16.mxu1 %v1485_v0  ;;  %291 = vmatprep.subr.bf16.mxu0 %v1297_v23 }
  0x56   :  { %1199 = vmatpush3.bf16.msra.mxu1 %v1299_v24  ;;  %292 = vmatpush1.bf16.msra.mxu0 %v1300_v25 }
  0x57   :  { %1220 = vmatprep.subr.bf16.mxu1 %v1485_v0  ;;  %1125 = vmatprep.subr.bf16.mxu0 %v1306_v26 }
  0x59   :  { %1201 = vmatmul.mubr.bf16.vlgmr.msra.gmra.mrb[0].mxu1 %v1301_v27  ;;  %310 = vmatmul.mubr.bf16.vlgmr.msra.gmra.mrb[0].mxu0 %v1301_v27 }
  0x5a   :  { %1204 = vmatprep.mubr.msk.bf16.mxu1 %vm1486_vm0, %v1485_v0  ;;  %319 = vmatprep.mubr.bf16.mxu0 %v1487_v1 }
  0x5b   :  { %1126 = vmatpush3.bf16.msra.mxu0 %v1307_v28  ;;  %1221 = vmatpush3.bf16.msra.mxu1 %v1310_v33 }
  0x5c   :  { %1222 = vmatprep.subr.bf16.mxu1 %v1485_v0  ;;  %1127 = vmatprep.subr.bf16.mxu0 %v1308_v35 }
  0x5f   :  { %1223 = vmatpush3.bf16.msra.mxu1 %v1313_v34  ;;  %1128 = vmatpush3.bf16.msra.mxu0 %v1309_v36 }
  0x60   :  { %1224 = vmatprep.subr.bf16.mxu1 %v1485_v0  ;;  %1129 = vmatprep.subr.bf16.mxu0 %v1311_v37 }
  0x61   :  { %1205 = vmatmul.mubr.bf16.gmra.mrb[4].mxu1 %v1302_v29  ;;  %320 = vmatmul.mubr.bf16.gmra.mrb[4].mxu0 %v1302_v29 }
  0x62   :  { %1208 = vmatprep.mubr.msk.bf16.mxu1 %vm1486_vm0, %v1485_v0  ;;  %329 = vmatprep.mubr.bf16.mxu0 %v1487_v1 }
  0x63   :  { %1130 = vmatpush3.bf16.msra.mxu0 %v1312_v38  ;;  %1225 = vmatpush3.bf16.msra.mxu1 %v1315_v39 }
  0x64   :  { %1226 = vmatprep.subr.bf16.mxu1 %v1485_v0  ;;  %1131 = vmatprep.subr.bf16.mxu0 %v1314_v41 }
  0x67   :  { %1227 = vmatpush3.bf16.msra.mxu1 %v1317_v40  ;;  %1132 = vmatpush3.bf16.msra.mxu0 %v1316_v42 }
  0x68   :  { %1228 = vmatprep.subr.bf16.mxu1 %v1485_v0  ;;  %1133 = vmatprep.subr.bf16.mxu0 %v1318_v43 }
  0x69   :  { %1209 = vmatmul.mubr.bf16.gmra.mrb[8].mxu1 %v1303_v30  ;;  %330 = vmatmul.mubr.bf16.gmra.mrb[8].mxu0 %v1303_v30 }
  0x6a   :  { %1212 = vmatprep.mubr.msk.bf16.mxu1 %vm1486_vm0, %v1485_v0  ;;  %339 = vmatprep.mubr.bf16.mxu0 %v1487_v1 }
  0x6b   :  { %1134 = vmatpush3.bf16.msra.mxu0 %v1319_v44  ;;  %1229 = vmatpush3.bf16.msra.mxu1 %v1320_v45 }
  0x6c   :  { %1230 = vmatprep.subr.bf16.mxu1 %v1485_v0  ;;  %1135 = vmatprep.subr.bf16.mxu0 %v1321_v47 }
  0x6f   :  { %1231 = vmatpush3.bf16.msra.mxu1 %v1323_v46  ;;  %1136 = vmatpush3.bf16.msra.mxu0 %v1322_v48 }
  0x70   :  { %1232 = vmatprep.subr.bf16.mxu1 %v1485_v0  ;;  %1137 = vmatprep.subr.bf16.mxu0 %v1324_v50 }
  0x71   :  { %1213 = vmatmul.mubr.bf16.gmra.mrb[12].mxu1 %v1304_v31  ;;  %340 = vmatmul.mubr.bf16.gmra.mrb[12].mxu0 %v1304_v31 }
  0x72   :  { %1216 = vmatprep.mubr.msk.bf16.mxu1 %vm1486_vm0, %v1485_v0  ;;  %349 = vmatprep.mubr.bf16.mxu0 %v1487_v1 }
  0x73   :  { %1233 = vmatpush3.bf16.msra.mxu1 %v1326_v49  ;;  %1138 = vmatpush3.bf16.msra.mxu0 %v1325_v51 }
  0x74   :  { %1234 = vmatprep.subr.bf16.mxu1 %v1485_v0  ;;  %1139 = vmatprep.subr.bf16.mxu0 %v1327_v53 }
  0x77   :  { %1235 = vmatpush3.bf16.msra.mxu1 %v1328_v52  ;;  %1140 = vmatpush3.bf16.msra.mxu0 %v1329_v54 }
  0x79   :  { %1217 = vmatmul.mubr.bf16.gmra.mrb[16].mxu1 %v1305_v32  ;;  %350 = vmatmul.mubr.bf16.gmra.mrb[16].mxu0 %v1305_v32 }
  0x7a   :  { %1236 = vmatprep.mubr.msk.bf16.mxu1 %vm1486_vm0, %v1485_v0 }
 0x12c   :  { %v392_v1 = vpop.f32.mrb[0].mxu1  ;;  %v311_v3 = vpop.f32.mrb[0].mxu0 }
 0x12d   :  { %v1600_v2 = vadd.f32 %v392_v1, %v1593_v61  ;;  %v1202_v4 = vpop.f32.mrb[1].mxu1  ;;  %v1603_v5 = vadd.f32 %v311_v3, %v1595_v62  ;;  %v313_v6 = vpop.f32.mrb[1].mxu0 }
 0x12e   :  { %v395_v7 = vpop.f32.mrb[2].mxu1  ;;  %v1608_v9 = vadd.f32 %v313_v6, %v1597_v63  ;;  %v315_v11 = vpop.f32.mrb[2].mxu0 }
 0x12f   :  { %v432_v8 = vmul.f32 %v1600_v2, %v1600_v2  ;;  %v1611_v10 = vadd.f32 %v395_v7, %v1593_v61  ;;  %v1203_v12 = vpop.f32.mrb[3].mxu1  ;;  %v430_v13 = vmul.f32 %v1603_v5, %v1603_v5  ;;  %v1616_v14 = vadd.f32 %v315_v11, %v1595_v62  ;;  %v317_v15 = vpop.f32.mrb[3].mxu0 }
 0x130   :  { %v431_v17 = vmul.f32 %v1608_v9, %v1608_v9  ;;  %v1624_v19 = vadd.f32 %v317_v15, %v1597_v63 }
 0x131   :  { %v459_v16 = vmul.f32 %v432_v8, %v1600_v2  ;;  %v435_v18 = vmul.f32 %v1611_v10, %v1611_v10  ;;  %v457_v20 = vmul.f32 %v430_v13, %v1603_v5  ;;  %v433_v21 = vmul.f32 %v1616_v14, %v1616_v14 }
 0x132   :  { %v458_v23 = vmul.f32 %v431_v17, %v1608_v9  ;;  %v434_v25 = vmul.f32 %v1624_v19, %v1624_v19 }
 0x133   :  { %v486_v22 = vmul.f32 0.044715, %v459_v16  ;;  %v462_v24 = vmul.f32 %v435_v18, %v1611_v10  ;;  %v484_v26 = vmul.f32 0.044715, %v457_v20  ;;  %v460_v27 = vmul.f32 %v433_v21, %v1616_v14 }
 0x134   :  { %v400_v28 = vpop.f32.mrb[4].mxu1  ;;  %v485_v30 = vmul.f32 0.044715, %v458_v23  ;;  %v461_v32 = vmul.f32 %v434_v25, %v1624_v19  ;;  %v321_v33 = vpop.f32.mrb[4].mxu0 }
 0x135   :  { %v513_v29 = vadd.f32 %v486_v22, %v1600_v2  ;;  %v489_v31 = vmul.f32 0.044715, %v462_v24  ;;  %v1206_v34 = vpop.f32.mrb[5].mxu1  ;;  %v511_v35 = vadd.f32 %v484_v26, %v1603_v5  ;;  %v487_v36 = vmul.f32 0.044715, %v460_v27  ;;  %v323_v39 = vpop.f32.mrb[5].mxu0 }
 0x136   :  { %v1638_v37 = vadd.f32 %v400_v28, %v1593_v61  ;;  %v1641_v38 = vadd.f32 %v321_v33, %v1595_v62  ;;  %v403_v40 = vpop.f32.mrb[6].mxu1  ;;  %v512_v42 = vadd.f32 %v485_v30, %v1608_v9  ;;  %v488_v44 = vmul.f32 0.044715, %v461_v32  ;;  %v325_v45 = vpop.f32.mrb[6].mxu0 }
 0x137   :  { %v540_v41 = vmul.f32 0.7978846, %v513_v29  ;;  %v516_v43 = vadd.f32 %v489_v31, %v1611_v10  ;;  %v1207_v46 = vpop.f32.mrb[7].mxu1  ;;  %v538_v47 = vmul.f32 0.7978846, %v511_v35  ;;  %v514_v48 = vadd.f32 %v487_v36, %v1616_v14  ;;  %v327_v51 = vpop.f32.mrb[7].mxu0 }
 0x138   :  { %v438_v49 = vmul.f32 %v1638_v37, %v1638_v37  ;;  %v436_v50 = vmul.f32 %v1641_v38, %v1641_v38  ;;  %v539_v52 = vmul.f32 0.7978846, %v512_v42  ;;  %v515_v54 = vadd.f32 %v488_v44, %v1624_v19 }
 0x139   :  { %1330 = vtanh.f32 %v540_v41  ;;  %v543_v53 = vmul.f32 0.7978846, %v516_v43  ;;  %v541_v55 = vmul.f32 0.7978846, %v514_v48  ;;  %v1654_v59 = vadd.f32 %v323_v39, %v1597_v63 }
 0x13a   :  { %1332 = vtanh.f32 %v538_v47  ;;  %v465_v56 = vmul.f32 %v438_v49, %v1638_v37  ;;  %v463_v57 = vmul.f32 %v436_v50, %v1641_v38  ;;  %v542_v58 = vmul.f32 0.7978846, %v515_v54 }
 0x13b   :  { %1334 = vtanh.f32 %v539_v52  ;;  %v1657_v60 = vadd.f32 %v403_v40, %v1593_v61  ;;  %v1660_v4 = vadd.f32 %v325_v45, %v1595_v62  ;;  %v437_v7 = vmul.f32 %v1654_v59, %v1654_v59 }
 0x13c   :  { %1336 = vtanh.f32 %v543_v53  ;;  %v492_v1 = vmul.f32 0.044715, %v465_v56  ;;  %v490_v3 = vmul.f32 0.044715, %v463_v57  ;;  %v408_v6 = vpop.f32.mrb[8].mxu1  ;;  %v1667_v11 = vadd.f32 %v327_v51, %v1597_v63  ;;  %v331_v12 = vpop.f32.mrb[8].mxu0 }
 0x13d   :  { %1338 = vtanh.f32 %v541_v55  ;;  %v441_v8 = vmul.f32 %v1657_v60, %v1657_v60  ;;  %v1210_v13 = vpop.f32.mrb[9].mxu1  ;;  %v439_v17 = vmul.f32 %v1660_v4, %v1660_v4  ;;  %v333_v18 = vpop.f32.mrb[9].mxu0  ;;  %v464_v21 = vmul.f32 %v437_v7, %v1654_v59 }
 0x13e   :  { %1340 = vtanh.f32 %v542_v58  ;;  %v519_v15 = vadd.f32 %v492_v1, %v1638_v37  ;;  %v517_v16 = vadd.f32 %v490_v3, %v1641_v38  ;;  %v1673_v20 = vpop.f32.mrb[10].mxu1  ;;  %v440_v23 = vmul.f32 %v1667_v11, %v1667_v11  ;;  %v1682_v25 = vpop.f32.mrb[10].mxu0 }
 0x13f   :  { %v468_v22 = vmul.f32 %v441_v8, %v1657_v60  ;;  %v1680_v24 = vadd.f32 %v408_v6, %v1593_v61  ;;  %v1211_v26 = vpop.f32.mrb[11].mxu1  ;;  %v466_v29 = vmul.f32 %v439_v17, %v1660_v4  ;;  %v1686_v30 = vadd.f32 %v331_v12, %v1595_v62  ;;  %v1688_v31 = vpop.f32.mrb[11].mxu0 }
 0x140   :  { %v546_v27 = vmul.f32 0.7978846, %v519_v15  ;;  %v544_v28 = vmul.f32 0.7978846, %v517_v16  ;;  %v491_v32 = vmul.f32 0.044715, %v464_v21  ;;  %v467_v34 = vmul.f32 %v440_v23, %v1667_v11 }
 0x141   :  { %v495_v33 = vmul.f32 0.044715, %v468_v22  ;;  %v444_v35 = vmul.f32 %v1680_v24, %v1680_v24  ;;  %v493_v36 = vmul.f32 0.044715, %v466_v29  ;;  %v442_v39 = vmul.f32 %v1686_v30, %v1686_v30 }
 0x142   :  { %1342 = vtanh.f32 %v546_v27  ;;  %v1696_v40 = vadd.f32 %v333_v18, %v1597_v63  ;;  %v518_v42 = vadd.f32 %v491_v32, %v1654_v59  ;;  %v494_v44 = vmul.f32 0.044715, %v467_v34 }
 0x143   :  { %v1331_v41 = vpop.eup %1330  ;;  %1344 = vtanh.f32 %v544_v28  ;;  %v522_v43 = vadd.f32 %v495_v33, %v1657_v60  ;;  %v520_v47 = vadd.f32 %v493_v36, %v1660_v4  ;;  %v471_v48 = vmul.f32 %v444_v35, %v1680_v24 }
 0x144   :  { %v1333_v45 = vpop.eup %1332  ;;  %v594_v46 = vadd.f32 1.0, %v1331_v41  ;;  %v469_v49 = vmul.f32 %v442_v39, %v1686_v30  ;;  %v416_v50 = vpop.f32.mrb[12].mxu1  ;;  %v545_v53 = vmul.f32 0.7978846, %v518_v42  ;;  %v521_v55 = vadd.f32 %v494_v44, %v1667_v11 }
 0x145   :  { %v1703_v51 = vpop.eup %1334  ;;  %v592_v52 = vadd.f32 1.0, %v1333_v45  ;;  %v549_v54 = vmul.f32 0.7978846, %v522_v43  ;;  %v341_v56 = vpop.f32.mrb[12].mxu0  ;;  %v547_v1 = vmul.f32 0.7978846, %v520_v47  ;;  %v443_v6 = vmul.f32 %v1696_v40, %v1696_v40 }
 0x146   :  { %v1337_v57 = vpop.eup %1336  ;;  %v621_v58 = vmul.f32 0.5, %v594_v46  ;;  %v498_v3 = vmul.f32 0.044715, %v471_v48  ;;  %v1214_v7 = vpop.f32.mrb[13].mxu1  ;;  %1346 = vtanh.f32 %v545_v53  ;;  %v548_v15 = vmul.f32 0.7978846, %v521_v55 }
 0x147   :  { %v1339_v8 = vpop.eup %1338  ;;  %v619_v12 = vmul.f32 0.5, %v592_v52  ;;  %v597_v13 = vadd.f32 1.0, %v1337_v57  ;;  %v343_v16 = vpop.f32.mrb[13].mxu0  ;;  %1348 = vtanh.f32 %v549_v54  ;;  %v496_v32 = vmul.f32 0.044715, %v469_v49 }
 0x148   :  { %v419_v17 = vpop.f32.mrb[14].mxu1  ;;  %v1708_v18 = vpop.eup %1340  ;;  %v648_v21 = vmul.f32 %v621_v58, %v1600_v2  ;;  %v595_v22 = vadd.f32 1.0, %v1339_v8  ;;  %v525_v23 = vadd.f32 %v498_v3, %v1680_v24  ;;  %1350 = vtanh.f32 %v547_v1 }
 0x149   :  { %v1712_v26 = vpop.f32.mrb[14].mxu0  ;;  %v1215_v27 = vpop.f32.mrb[15].mxu1  ;;  %v1715_v28 = vmul.f32 %v619_v12, %v1603_v5  ;;  %v624_v29 = vmul.f32 0.5, %v597_v13  ;;  %1352 = vtanh.f32 %v548_v15  ;;  %v470_v2 = vmul.f32 %v443_v6, %v1696_v40 }
 0x14a   :  { %v1717_v33 = vpop.f32.mrb[15].mxu0  ;;  %v622_v34 = vmul.f32 0.5, %v595_v22  ;;  %v552_v35 = vmul.f32 0.7978846, %v525_v23  ;;  %v523_v39 = vadd.f32 %v496_v32, %v1686_v30  ;;  %v1724_v41 = vadd.f32 %v1673_v20, %v1593_v61 }
 0x14b   :  { %v651_v36 = vmul.f32 %v624_v29, %v1611_v10  ;;  %v1728_v5 = vadd.f32 %v1682_v25, %v1595_v62  ;;  %v497_v44 = vmul.f32 0.044715, %v470_v2  ;;  %v1737_v10 = vadd.f32 %v1688_v31, %v1597_v63 }
 0x14c   :  { %v1730_v42 = vpop.eup %1342  ;;  %v1733_v43 = vmul.f32 %v622_v34, %v1616_v14  ;;  %1354 = vtanh.f32 %v552_v35  ;;  %v1739_v45 = vpop.f32.mrb[16].mxu1  ;;  %v550_v47 = vmul.f32 0.7978846, %v523_v39  ;;  %v447_v25 = vmul.f32 %v1724_v41, %v1724_v41 }
 0x14d   :  { %v1741_v46 = vpop.eup %1344  ;;  %v675_v20 = vpack.c.bf16 %v651_v36, %v648_v21  ;;  %v445_v48 = vmul.f32 %v1728_v5, %v1728_v5  ;;  %v1747_v14 = vpop.f32.mrb[16].mxu0  ;;  %v524_v31 = vadd.f32 %v497_v44, %v1696_v40  ;;  %v446_v53 = vmul.f32 %v1737_v10, %v1737_v10 }
 0x14e   :  { %v1218_v49 = vpop.f32.mrb[17].mxu1  ;;  %v673_v52 = vpack.c.bf16 %v1733_v43, %v1715_v28  ;;  %v1755_v54 = vadd.f32 %v416_v50, %v1593_v61  ;;  %v1757_v55 = vpop.f32.mrb[17].mxu0  ;;  %1356 = vtanh.f32 %v550_v47  ;;  %v474_v58 = vmul.f32 %v447_v25, %v1724_v41 }
 0x14f   :  { %v427_v57 = vpop.f32.mrb[18].mxu1  ;;  %v472_v1 = vmul.f32 %v445_v48, %v1728_v5  ;;  %v1762_v3 = vadd.f32 %v341_v56, %v1595_v62  ;;  %1237 = vmatmul.mubr.bf16.vlgmr.msra.gmra.mrb[20].mxu1 %v675_v20  ;;  %v355_v6 = vpop.f32.mrb[18].mxu0  ;;  %v551_v8 = vmul.f32 0.7978846, %v524_v31  ;;  %v473_v12 = vmul.f32 %v446_v53, %v1737_v10 }
 0x150   :  { %v1219_v7 = vpop.f32.mrb[19].mxu1  ;;  %v450_v50 = vmul.f32 %v1755_v54, %v1755_v54  ;;  %v1768_v13 = vadd.f32 %v343_v16, %v1597_v63  ;;  %v356_v15 = vpop.f32.mrb[19].mxu0  ;;  %1240 = vmatprep.mubr.msk.bf16.mxu1 %vm1486_vm0, %v1485_v0  ;;  %v501_v56 = vmul.f32 0.044715, %v474_v58  ;;  %v1777_v27 = vadd.f32 %v419_v17, %v1593_v61 }
 0x151   :  { %v1772_v21 = vpop.eup %1346  ;;  %v499_v22 = vmul.f32 0.044715, %v472_v1  ;;  %v448_v23 = vmul.f32 %v1762_v3, %v1762_v3  ;;  %1358 = vtanh.f32 %v551_v8  ;;  %v500_v32 = vmul.f32 0.044715, %v473_v12 }
 0x152   :  { %v1779_v29 = vpop.eup %1348  ;;  %v477_v16 = vmul.f32 %v450_v50, %v1755_v54  ;;  %v449_v34 = vmul.f32 %v1768_v13, %v1768_v13  ;;  %v528_v2 = vadd.f32 %v501_v56, %v1724_v41  ;;  %v453_v17 = vmul.f32 %v1777_v27, %v1777_v27 }
 0x153   :  { %v1784_v35 = vpop.eup %1350  ;;  %v526_v36 = vadd.f32 %v499_v22, %v1728_v5  ;;  %v475_v39 = vmul.f32 %v448_v23, %v1762_v3  ;;  %v527_v20 = vadd.f32 %v500_v32, %v1737_v10  ;;  %v1797_v48 = vadd.f32 %v1712_v26, %v1595_v62 }
 0x154   :  { %v1791_v44 = vpop.eup %1352  ;;  %v504_v47 = vmul.f32 0.044715, %v477_v16  ;;  %v476_v25 = vmul.f32 %v449_v34, %v1768_v13  ;;  %v555_v49 = vmul.f32 0.7978846, %v528_v2  ;;  %v480_v57 = vmul.f32 %v453_v17, %v1777_v27 }
 0x155   :  { %v553_v31 = vmul.f32 0.7978846, %v526_v36  ;;  %v502_v53 = vmul.f32 0.044715, %v475_v39  ;;  %v554_v1 = vmul.f32 0.7978846, %v527_v20  ;;  %v451_v8 = vmul.f32 %v1797_v48, %v1797_v48 }
 0x156   :  { %v1800_v58 = vpop.eup %1354  ;;  %v531_v6 = vadd.f32 %v504_v47, %v1755_v54  ;;  %v503_v7 = vmul.f32 0.044715, %v476_v25  ;;  %1360 = vtanh.f32 %v555_v49  ;;  %v507_v50 = vmul.f32 0.044715, %v480_v57 }
 0x157   :  { %v529_v12 = vadd.f32 %v502_v53, %v1762_v3  ;;  %v1808_v26 = vadd.f32 %v1717_v33, %v1597_v63  ;;  %1362 = vtanh.f32 %v553_v31  ;;  %v478_v22 = vmul.f32 %v451_v8, %v1797_v48 }
 0x158   :  { %v558_v15 = vmul.f32 0.7978846, %v531_v6  ;;  %v530_v56 = vadd.f32 %v503_v7, %v1768_v13  ;;  %v1812_v23 = vpop.eup %1356  ;;  %1364 = vtanh.f32 %v554_v1  ;;  %v534_v16 = vadd.f32 %v507_v50, %v1777_v27 }
 0x159   :  { %v556_v32 = vmul.f32 0.7978846, %v529_v12  ;;  %v452_v34 = vmul.f32 %v1808_v26, %v1808_v26  ;;  %v505_v36 = vmul.f32 0.044715, %v478_v22  ;;  %v1819_v33 = vadd.f32 %v1739_v45, %v1593_v61 }
 0x15a   :  { %1366 = vtanh.f32 %v558_v15  ;;  %v557_v2 = vmul.f32 0.7978846, %v530_v56  ;;  %v561_v39 = vmul.f32 0.7978846, %v534_v16  ;;  %v1824_v20 = vadd.f32 %v1747_v14, %v1595_v62 }
 0x15b   :  { %1368 = vtanh.f32 %v556_v32  ;;  %v479_v17 = vmul.f32 %v452_v34, %v1808_v26  ;;  %v1826_v47 = vpop.eup %1358  ;;  %v532_v25 = vadd.f32 %v505_v36, %v1797_v48  ;;  %v456_v49 = vmul.f32 %v1819_v33, %v1819_v33 }
 0x15c   :  { %1370 = vtanh.f32 %v557_v2  ;;  %v1833_v61 = vadd.f32 %v1757_v55, %v1597_v63  ;;  %v454_v31 = vmul.f32 %v1824_v20, %v1824_v20  ;;  %v593_v62 = vadd.f32 1.0, %v1703_v51 }
 0x15d   :  { %1372 = vtanh.f32 %v561_v39  ;;  %v506_v45 = vmul.f32 0.044715, %v479_v17  ;;  %v559_v14 = vmul.f32 0.7978846, %v532_v25  ;;  %v483_v53 = vmul.f32 %v456_v49, %v1819_v33 }
 0x15e   :  { %v455_v57 = vmul.f32 %v1833_v61, %v1833_v61  ;;  %v596_v1 = vadd.f32 1.0, %v1708_v18  ;;  %v481_v63 = vmul.f32 %v454_v31, %v1824_v20  ;;  %v620_v55 = vmul.f32 0.5, %v593_v62 }
 0x15f   :  { %v533_v6 = vadd.f32 %v506_v45, %v1808_v26  ;;  %v600_v7 = vadd.f32 1.0, %v1730_v42  ;;  %1374 = vtanh.f32 %v559_v14  ;;  %v510_v8 = vmul.f32 0.044715, %v483_v53 }
 0x160   :  { %v482_v12 = vmul.f32 %v455_v57, %v1833_v61  ;;  %v623_v51 = vmul.f32 0.5, %v596_v1  ;;  %v1361_v50 = vpop.eup %1360  ;;  %v508_v56 = vmul.f32 0.044715, %v481_v63  ;;  %v647_v22 = vmul.f32 %v620_v55, %v1608_v9 }
 0x161   :  { %v560_v15 = vmul.f32 0.7978846, %v533_v6  ;;  %v603_v32 = vadd.f32 1.0, %v1779_v29  ;;  %v1363_v18 = vpop.eup %1362  ;;  %v537_v16 = vadd.f32 %v510_v8, %v1819_v33  ;;  %v627_v36 = vmul.f32 0.5, %v600_v7 }
 0x162   :  { %v509_v34 = vmul.f32 0.044715, %v482_v12  ;;  %v650_v2 = vmul.f32 %v623_v51, %v1624_v19  ;;  %v1365_v42 = vpop.eup %1364  ;;  %v535_v39 = vadd.f32 %v508_v56, %v1824_v20  ;;  %v599_v25 = vadd.f32 1.0, %v1772_v21 }
 0x163   :  { %1376 = vtanh.f32 %v560_v15  ;;  %v630_v17 = vmul.f32 0.5, %v603_v32  ;;  %v564_v45 = vmul.f32 0.7978846, %v537_v16  ;;  %v654_v29 = vmul.f32 %v627_v36, %v1638_v37 }
 0x164   :  { %v1367_v49 = vpop.eup %1366  ;;  %v536_v9 = vadd.f32 %v509_v34, %v1833_v61  ;;  %v674_v31 = vpack.c.bf16 %v650_v2, %v647_v22  ;;  %v562_v14 = vmul.f32 0.7978846, %v535_v39  ;;  %v602_v19 = vadd.f32 1.0, %v1791_v44 }
 0x165   :  { %v1369_v62 = vpop.eup %1368  ;;  %v657_v53 = vmul.f32 %v630_v17, %v1657_v60  ;;  %v626_v57 = vmul.f32 0.5, %v599_v25  ;;  %1378 = vtanh.f32 %v564_v45  ;;  %v598_v21 = vadd.f32 1.0, %v1741_v46 }
 0x166   :  { %v1371_v1 = vpop.eup %1370  ;;  %v563_v6 = vmul.f32 0.7978846, %v536_v9  ;;  %919 = vmatprep.mubr.bf16.mxu0 %v674_v31  ;;  %v601_v63 = vadd.f32 1.0, %v1784_v35  ;;  %1380 = vtanh.f32 %v562_v14  ;;  %v629_v7 = vmul.f32 0.5, %v602_v19 }
 0x167   :  { %v1373_v55 = vpop.eup %1372  ;;  %920 = vmatmul.mubr.bf16.vlgmr.msra.gmra.mrb[20].mxu0 %v673_v52  ;;  %v678_v37 = vpack.c.bf16 %v657_v53, %v654_v29  ;;  %v653_v60 = vmul.f32 %v626_v57, %v1654_v59  ;;  %v625_v44 = vmul.f32 0.5, %v598_v21  ;;  %v606_v12 = vadd.f32 1.0, %v1800_v58 }
 0x168   :  { %1382 = vtanh.f32 %v563_v6  ;;  %v628_v8 = vmul.f32 0.5, %v601_v63  ;;  %v656_v46 = vmul.f32 %v629_v7, %v1667_v11  ;;  %v609_v51 = vadd.f32 1.0, %v1361_v50 }
 0x169   :  { %1241 = vmatmul.mubr.bf16.gmra.mrb[24].mxu1 %v678_v37  ;;  %v605_v35 = vadd.f32 1.0, %v1826_v47  ;;  %v608_v15 = vadd.f32 1.0, %v1365_v42  ;;  %v1375_v56 = vpop.eup %1374  ;;  %v652_v28 = vmul.f32 %v625_v44, %v1641_v38  ;;  %v633_v59 = vmul.f32 0.5, %v606_v12 }
 0x16a   :  { %v655_v43 = vmul.f32 %v628_v8, %v1660_v4  ;;  %1244 = vmatprep.mubr.msk.bf16.mxu1 %vm1486_vm0, %v1485_v0  ;;  %v604_v52 = vadd.f32 1.0, %v1812_v23  ;;  %v677_v22 = vpack.c.bf16 %v656_v46, %v653_v60  ;;  %v636_v58 = vmul.f32 0.5, %v609_v51 }
 0x16b   :  { %v632_v32 = vmul.f32 0.5, %v605_v35  ;;  %v635_v16 = vmul.f32 0.5, %v608_v15  ;;  %v660_v50 = vmul.f32 %v633_v59, %v1680_v24  ;;  %v607_v47 = vadd.f32 1.0, %v1363_v18 }
 0x16c   :  { %v676_v11 = vpack.c.bf16 %v655_v43, %v652_v28  ;;  %v631_v34 = vmul.f32 0.5, %v604_v52  ;;  %927 = vmatprep.mubr.bf16.mxu0 %v677_v22  ;;  %v663_v38 = vmul.f32 %v636_v58, %v1724_v41  ;;  %v612_v42 = vadd.f32 1.0, %v1367_v49 }
 0x16d   :  { %v1377_v2 = vpop.eup %1376  ;;  %v659_v4 = vmul.f32 %v632_v32, %v1696_v40  ;;  %v662_v36 = vmul.f32 %v635_v16, %v1737_v10  ;;  %v634_v39 = vmul.f32 0.5, %v607_v47  ;;  %v615_v17 = vadd.f32 1.0, %v1373_v55 }
 0x16e   :  { %v658_v23 = vmul.f32 %v631_v34, %v1686_v30  ;;  %v611_v25 = vadd.f32 1.0, %v1371_v1  ;;  %v681_v45 = vpack.c.bf16 %v663_v38, %v660_v50  ;;  %v639_v24 = vmul.f32 0.5, %v612_v42 }
 0x16f   :  { %928 = vmatmul.mubr.bf16.gmra.mrb[24].mxu0 %v676_v11  ;;  %v680_v9 = vpack.c.bf16 %v662_v36, %v659_v4  ;;  %v614_v18 = vadd.f32 1.0, %v1377_v2  ;;  %v1379_v31 = vpop.eup %1378  ;;  %v661_v29 = vmul.f32 %v634_v39, %v1728_v5  ;;  %v642_v14 = vmul.f32 0.5, %v615_v17 }
 0x170   :  { %v638_v41 = vmul.f32 0.5, %v611_v25  ;;  %v610_v53 = vadd.f32 1.0, %v1369_v62  ;;  %v1381_v40 = vpop.eup %1380  ;;  %v666_v10 = vmul.f32 %v639_v24, %v1755_v54  ;;  %v613_v30 = vadd.f32 1.0, %v1375_v56 }
 0x171   :  { %1245 = vmatmul.mubr.bf16.gmra.mrb[28].mxu1 %v681_v45  ;;  %935 = vmatprep.mubr.bf16.mxu0 %v680_v9  ;;  %v641_v49 = vmul.f32 0.5, %v614_v18  ;;  %v679_v57 = vpack.c.bf16 %v661_v29, %v658_v23  ;;  %v669_v1 = vmul.f32 %v642_v14, %v1777_v27  ;;  %v618_v21 = vadd.f32 1.0, %v1379_v31 }
 0x172   :  { %v1383_v19 = vpop.eup %1382  ;;  %1248 = vmatprep.mubr.msk.bf16.mxu1 %vm1486_vm0, %v1485_v0  ;;  %v637_v6 = vmul.f32 0.5, %v610_v53  ;;  %v665_v5 = vmul.f32 %v638_v41, %v1768_v13  ;;  %v640_v63 = vmul.f32 0.5, %v613_v30  ;;  %v616_v46 = vadd.f32 1.0, %v1381_v40 }
 0x173   :  { %v668_v62 = vmul.f32 %v641_v49, %v1808_v26  ;;  %v617_v55 = vadd.f32 1.0, %v1383_v19  ;;  %v684_v37 = vpack.c.bf16 %v669_v1, %v666_v10  ;;  %v645_v12 = vmul.f32 0.5, %v618_v21 }
 0x174   :  { %v664_v54 = vmul.f32 %v637_v6, %v1762_v3  ;;  %v667_v60 = vmul.f32 %v640_v63, %v1797_v48  ;;  %v643_v51 = vmul.f32 0.5, %v616_v46 }
 0x175   :  { %v683_v7 = vpack.c.bf16 %v668_v62, %v665_v5  ;;  %v644_v44 = vmul.f32 0.5, %v617_v55  ;;  %v672_v13 = vmul.f32 %v645_v12, %v1819_v33 }
 0x176   :  { %v682_v8 = vpack.c.bf16 %v667_v60, %v664_v54  ;;  %v670_v48 = vmul.f32 %v643_v51, %v1824_v20 }
 0x177   :  { %936 = vmatmul.mubr.bf16.gmra.mrb[28].mxu0 %v679_v57  ;;  %v671_v27 = vmul.f32 %v644_v44, %v1833_v61  ;;  %v687_v3 = vpack.c.bf16 %v672_v13, %v672_v13 }
 0x178   :  { %943 = vmatprep.mubr.bf16.mxu0 %v683_v7  ;;  %v685_v35 = vpack.c.bf16 %v670_v48, %v670_v48 }
 0x179   :  { %1249 = vmatmul.mubr.bf16.gmra.mrb[32].mxu1 %v684_v37  ;;  %v686_v26 = vpack.c.bf16 %v671_v27, %v671_v27 }
 0x17a   :  { %1252 = vmatprep.mubr.msk.bf16.mxu1 %vm1486_vm0, %v1485_v0  ;;  %v1892_v0 = vld [vmem:[%s1919_s4] ss:$0 sm:$0xff]  ;;  %s1488_s4 = smov [#allocation8]  }
 0x17b   :  { %s1045_s8 = sshll.u32 %s1488_s4, 4  ;;  %s1046_s8 = int_to_ptr.vmem [resolvable:$true] %s1045_s8 }
 0x17c   :  { %s1450_s9 = scalar_lea.vmem %s1046_s8, 1152  ;;  %p1455_p11 = scmp.lt.s32.totalorder %s1046_s8, %s1046_s8 }
 0x17d   :  { %p1451_p10 = scmp.ne.s32.totalorder %s1046_s8, %s1450_s9  ;;  %p1456_p12 = scmp.lt.s32.totalorder %s1450_s9, %s1450_s9 }
 0x17f   :  { %944 = vmatmul.mubr.bf16.gmra.mrb[32].mxu0 %v682_v8  ;;  %p1457_p13 = por %p1456_p12, %p1455_p11 }
 0x180   :  { %951 = vmatprep.mubr.bf16.mxu0 %v686_v26 }
 0x181   :  { %1253 = vmatmul.mubr.bf16.gmra.mrb[36].mxu1 %v687_v3  ;;  %p1458_p0 = pnand %p1457_p13, %p1451_p10 }
 0x187   :  { %952 = vmatmul.mubr.bf16.gmra.mrb[36].mxu0 %v685_v35 }
 0x222   :  { %v993_v15 = vpop.f32.mrb[20].mxu1 }
 0x223   :  { %v1238_v56 = vpop.f32.mrb[21].mxu1 }
 0x224   :  { %v996_v61 = vpop.f32.mrb[22].mxu1 }
 0x225   :  { %v1239_v28 = vpop.f32.mrb[23].mxu1 }
 0x23a   :  { %v1141_v43 = vpop.f32.mrb[20].mxu0 }
 0x23b   :  { %v1142_v33 = vpop.f32.mrb[21].mxu0 }
 0x23c   :  { %v1143_v59 = vadd.f32 %v1142_v33, %v1141_v43  ;;  %v1144_v52 = vpop.f32.mrb[22].mxu0  ;;  %v1001_v22 = vpop.f32.mrb[24].mxu1 }
 0x23d   :  { %v1145_v58 = vpop.f32.mrb[23].mxu0  ;;  %v1242_v32 = vpop.f32.mrb[25].mxu1 }
 0x23e   :  { %v922_v20 = vadd.f32 %v1143_v59, %v1892_v0  ;;  %v1146_v16 = vadd.f32 %v1145_v58, %v1144_v52  ;;  %v1004_v11 = vpop.f32.mrb[26].mxu1 }
 0x23f   :  { %v1243_v50 = vpop.f32.mrb[27].mxu1 }
 0x240   :  { %v994_v47 = vadd.f32 %v993_v15, %v922_v20  ;;  %v925_v34 = vadd.f32 %v1146_v16, %v1892_v0 }
 0x242   :  { %1031 = vst [vmem:[#allocation8] sm:$0xff] %v994_v47  ;;  %v997_v2 = vadd.f32 %v996_v61, %v925_v34  ;;  %v1147_v38 = vpop.f32.mrb[24].mxu0 }
 0x243   :  { %v1148_v4 = vpop.f32.mrb[25].mxu0 }
 0x244   :  { %1032 = vst [vmem:[#allocation8 + $0x8] sm:$0xff] %v997_v2  ;;  %v1149_v36 = vadd.f32 %v1148_v4, %v1147_v38  ;;  %v1150_v42 = vpop.f32.mrb[26].mxu0  ;;  %v1009_v39 = vpop.f32.mrb[28].mxu1 }
 0x245   :  { %v1151_v23 = vpop.f32.mrb[27].mxu0  ;;  %v1246_v17 = vpop.f32.mrb[29].mxu1 }
 0x246   :  { %v930_v25 = vadd.f32 %v1149_v36, %v1892_v0  ;;  %v1152_v45 = vadd.f32 %v1151_v23, %v1150_v42  ;;  %v1012_v9 = vpop.f32.mrb[30].mxu1 }
 0x247   :  { %v1247_v24 = vpop.f32.mrb[31].mxu1 }
 0x248   :  { %v1002_v18 = vadd.f32 %v1001_v22, %v930_v25  ;;  %v933_v31 = vadd.f32 %v1152_v45, %v1892_v0 }
 0x24a   :  { %1033 = vst [vmem:[#allocation8 + $0x10] sm:$0xff] %v1002_v18  ;;  %v1005_v29 = vadd.f32 %v1004_v11, %v933_v31  ;;  %v1153_v14 = vpop.f32.mrb[28].mxu0 }
 0x24b   :  { %v1154_v41 = vpop.f32.mrb[29].mxu0 }
 0x24c   :  { %1034 = vst [vmem:[#allocation8 + $0x18] sm:$0xff] %v1005_v29  ;;  %v1155_v53 = vadd.f32 %v1154_v41, %v1153_v14  ;;  %v1156_v40 = vpop.f32.mrb[30].mxu0  ;;  %v1017_v10 = vpop.f32.mrb[32].mxu1 }
 0x24d   :  { %v1157_v49 = vpop.f32.mrb[31].mxu0  ;;  %v1250_v30 = vpop.f32.mrb[33].mxu1 }
 0x24e   :  { %v938_v19 = vadd.f32 %v1155_v53, %v1892_v0  ;;  %v1158_v57 = vadd.f32 %v1157_v49, %v1156_v40  ;;  %v1020_v1 = vpop.f32.mrb[34].mxu1 }
 0x24f   :  { %v1251_v6 = vpop.f32.mrb[35].mxu1 }
 0x250   :  { %v1010_v21 = vadd.f32 %v1009_v39, %v938_v19  ;;  %v941_v5 = vadd.f32 %v1158_v57, %v1892_v0 }
 0x252   :  { %1035 = vst [vmem:[#allocation8 + $0x20] sm:$0xff] %v1010_v21  ;;  %v1013_v62 = vadd.f32 %v1012_v9, %v941_v5  ;;  %v1159_v63 = vpop.f32.mrb[32].mxu0 }
 0x253   :  { %v1160_v55 = vpop.f32.mrb[33].mxu0 }
 0x254   :  { %1036 = vst [vmem:[#allocation8 + $0x28] sm:$0xff] %v1013_v62  ;;  %v1161_v37 = vadd.f32 %v1160_v55, %v1159_v63  ;;  %v1162_v7 = vpop.f32.mrb[34].mxu0  ;;  %v1025_v54 = vpop.f32.mrb[36].mxu1 }
 0x255   :  { %v1163_v60 = vpop.f32.mrb[35].mxu0  ;;  %v1254_v44 = vpop.f32.mrb[37].mxu1 }
 0x256   :  { %v946_v8 = vadd.f32 %v1161_v37, %v1892_v0  ;;  %v1164_v12 = vadd.f32 %v1163_v60, %v1162_v7  ;;  %v1028_v27 = vpop.f32.mrb[38].mxu1 }
 0x257   :  { %v1255_v46 = vpop.f32.mrb[39].mxu1 }
 0x258   :  { %v1018_v13 = vadd.f32 %v1017_v10, %v946_v8  ;;  %v949_v26 = vadd.f32 %v1164_v12, %v1892_v0 }
 0x25a   :  { %1037 = vst [vmem:[#allocation8 + $0x30] sm:$0xff] %v1018_v13  ;;  %v1021_v51 = vadd.f32 %v1020_v1, %v949_v26  ;;  %v1165_v3 = vpop.f32.mrb[36].mxu0 }
 0x25b   :  { %v1166_v48 = vpop.f32.mrb[37].mxu0 }
 0x25c   :  { %1038 = vst [vmem:[#allocation8 + $0x38] sm:$0xff] %v1021_v51  ;;  %v1167_v35 = vadd.f32 %v1166_v48, %v1165_v3  ;;  %v1168_v15 = vpop.f32.mrb[38].mxu0 }
 0x25d   :  { %v1169_v56 = vpop.f32.mrb[39].mxu0 }
 0x25e   :  { %v954_v61 = vadd.f32 %v1167_v35, %v1892_v0 }
 0x260   :  { %v1026_v28 = vadd.f32 %v1025_v54, %v954_v61 }
 0x262   :  { %1039 = vst [vmem:[#allocation8 + $0x40] sm:$0xff] %v1026_v28 }
 0x263   :  { %1461 = shalt.err (!%p1458_p0)
}
 0x264   :  { %s1462_s12 = scalar_lea.hbm %s1920_s5, 1152 }
 0x265   :  { %p1463_p1 = scmp.ne.s32.totalorder %s1920_s5, %s1462_s12  ;;  %p1466_p2 = scmp.lt.u32.totalorder %s1462_s12, %s1920_s5 }
 0x267   :  { %p1468_p3 = pnand %p1466_p2, %p1463_p1 }
 0x269   :  { %1471 = shalt.err (!%p1468_p3)
}
 0x26a   :  { %s1489_s1 = smov 128   ;;  %s1490_s17 = smov 8  }
 0x26b   :  { %1051 = dma.vmem_to_hbm [thread:$0]  %s1046_s8, 1152, %s1920_s5, [#allocation4], %s1489_s1, %s1489_s1, %s1490_s17  }
 0x26c   :  { %1476 = dma.done.wait [#allocation4], 1152  }
 0x26d   :  { %1477 = vsyncadd [#allocation4], 4294966144 }
 0x26e   :  { %1055 = vsyncpa [#allocation3], 1 }
 0x26f   :  { %1056 = vsyncpa [#allocation6], 1 }
 0x270   :  { %1057 = vsyncpa [#allocation4], 1 }

</bundles_post_ra>
